<compile_context>
chip_gen: v5e
topology: v5e:2x2
jax: 0.10.0
libtpu: 0.0.40
codegen_flags: <defaults>
</compile_context>

<pallas_src>
import functools

import jax
import jax.numpy as jnp
from jax.experimental import pallas as pl
from jax.experimental.pallas import tpu as pltpu


def _round_up(x, m):
    return (x + m - 1) // m * m


def conv_block_kernel(x_ref, *refs, num_layers, conv_k, conv_len, pool_k,
                      pad_left, b_tile, seg_len, compute_dtype):
    """Processes one batch tile of `b_tile` elements, flattened along rows.

    x_ref  : (b_tile * seg_len, C_in)  -- per-batch 'same'-padded, channels-last,
                                          batch elements concatenated along rows
    refs   : (w_0, b_0, ..., w_{n-1}, b_{n-1}, out_ref, act_ref)
             w_i : (K * C_in_i, C_out)  (im2col layout)     b_i : (1, C_out)
    out_ref: (b_tile * (L // pool_k), C_out)
    act_ref: (b_tile * seg_len, C_out) f32 VMEM scratch (padded activations)
    """
    out_ref = refs[2 * num_layers]
    act_ref = refs[2 * num_layers + 1]

    L = conv_len
    P = seg_len
    K = conv_k
    R_pad = b_tile * P
    R_valid = R_pad - (K - 1)
    l_out = L // pool_k
    c_out = act_ref.shape[1]

    # Zero the scratch once per grid step; pad rows that are never overwritten
    # stay zero for every layer (gives the per-layer 'same' padding for free).
    act_ref[...] = jnp.zeros_like(act_ref)

    for layer in range(num_layers):
        w_ref = refs[2 * layer]          # (K * C_in_layer, C_out), compute dtype
        b_ref = refs[2 * layer + 1]      # (1, C_out), f32
        src = x_ref if layer == 0 else act_ref

        # im2col: K shifted windows concatenated on the lane axis -> ONE MXU matmul
        # per layer over the whole flattened batch tile.
        cols = jnp.concatenate(
            [src[pl.ds(k, R_valid), :] for k in range(K)], axis=1)
        acc = jnp.dot(cols.astype(compute_dtype), w_ref[...],
                      preferred_element_type=jnp.float32)
        h = jnp.maximum(acc + b_ref[...], 0.0)            # bias + ReLU, f32

        # Write back into the padded scratch: valid output row l of batch b lands at
        # scratch row b*P + pad_left + l. Rows that fall between batch segments carry
        # cross-segment garbage; re-zero those strips so the next layer's edge windows
        # see true zero padding (no cross-batch bleed).
        act_ref[pl.ds(pad_left, R_valid), :] = h

        if layer < num_layers - 1:
            for b in range(b_tile):
                start = b * P + pad_left + L
                n = min(P - L, R_pad - start)
                if n > 0:
                    act_ref[pl.ds(start, n), :] = jnp.zeros((n, c_out), jnp.float32)

    # MaxPool1d(pool_k): strided VMEM reads + VPU max (floor division on length).
    for b in range(b_tile):
        base = b * P + pad_left
        pooled = act_ref[pl.ds(base, l_out, stride=pool_k), :]
        for j in range(1, pool_k):
            pooled = jnp.maximum(
                pooled, act_ref[pl.ds(base + j, l_out, stride=pool_k), :])
        out_ref[pl.ds(b * l_out, l_out), :] = pooled.astype(out_ref.dtype)


def conv_block_forward(x, weights, biases, *, conv_kernel_size,
                       max_pool_kernel_size, stride=1, padding='same',
                       compute_dtype=jnp.float32, batch_tiles=None):
    """x: (B, C_in, L) float32 (PyTorch layout).
    weights[i]: (K, C_in_i, C_out)  (= torch Conv1d weight (O, I, K) transposed (2,1,0))
    biases[i] : (1, C_out)
    compute_dtype: dtype of MXU matmul operands (use jnp.bfloat16 on v6e/v7x).
    Returns (B, C_out, L // max_pool_kernel_size) float32."""
    # TODO(synk): only stride=1 with padding='same' (the module defaults) is implemented.
    assert stride == 1 and padding == 'same', "only stride=1 / padding='same' supported"

    B, c_in, L = x.shape
    K = conv_kernel_size
    mp = max_pool_kernel_size
    num_layers = len(weights)
    c_out = weights[-1].shape[-1]
    l_out = L // mp
    assert l_out >= 1

    total_pad = K - 1
    pad_left = total_pad // 2           # matches torch padding='same' for stride=1, odd K
    # TODO(synk): verify the asymmetric pad split against torch for even conv_kernel_size.

    # Per-batch padded segment, rounded to a sublane multiple so batch-tiled
    # BlockSpecs keep their second-to-last dim divisible by 8.
    seg_len = _round_up(L + total_pad, 8)

    # Fold the batch into as few grid steps as possible (amortizes the ~0.5us/step
    # pipeline overhead, grows the MXU M dim), but keep 2 parallel steps when cheap
    # so both v7x TensorCores get work (on v5e/v6e the extra step is negligible here).
    if batch_tiles is None:
        batch_tiles = 2 if (B % 2 == 0 and ((B // 2) * l_out) % 8 == 0) else 1
    assert B % batch_tiles == 0
    b_tile = B // batch_tiles
    if batch_tiles > 1:
        assert (b_tile * l_out) % 8 == 0, "output tile rows must be sublane-aligned"

    # channels-last + per-batch 'same' padding (to seg_len), flatten batch into rows.
    x_cl = jnp.transpose(x, (0, 2, 1)).astype(jnp.float32)             # (B, L, C_in)
    x_cl = jnp.pad(x_cl, ((0, 0), (pad_left, seg_len - L - pad_left), (0, 0)))
    x_flat = x_cl.reshape(B * seg_len, c_in)                           # (B*P, C_in)

    in_specs = [pl.BlockSpec((b_tile * seg_len, c_in), lambda i: (i, 0))]
    operands = [x_flat]
    for w, b in zip(weights, biases):
        kk, ci, co = w.shape
        w_flat = w.reshape(kk * ci, co).astype(compute_dtype)    # im2col weight layout
        in_specs.append(pl.BlockSpec(w_flat.shape, lambda i: (0, 0)))   # replicated
        in_specs.append(pl.BlockSpec(b.shape, lambda i: (0, 0)))        # replicated
        operands += [w_flat, b.astype(jnp.float32)]

    kernel = functools.partial(
        conv_block_kernel, num_layers=num_layers, conv_k=K, conv_len=L,
        pool_k=mp, pad_left=pad_left, b_tile=b_tile, seg_len=seg_len,
        compute_dtype=compute_dtype)

    out = pl.pallas_call(
        kernel,
        out_shape=jax.ShapeDtypeStruct((B * l_out, c_out), jnp.float32),
        grid_spec=pltpu.PrefetchScalarGridSpec(
            num_scalar_prefetch=0,
            grid=(batch_tiles,),
            in_specs=in_specs,
            out_specs=pl.BlockSpec((b_tile * l_out, c_out), lambda i: (i, 0)),
            scratch_shapes=[pltpu.VMEM((b_tile * seg_len, c_out), jnp.float32)],
        ),
        compiler_params=pltpu.CompilerParams(
            dimension_semantics=("parallel",)),
        # VMEM footprint here is a few KiB; set vmem_limit_bytes if tiles are scaled
        # (v7x scoped default is 32 MiB of 64 MiB physical).
    )(*operands)

    # Kernel emits a single contiguous (rows, C_out) slab; the layout shuffle back
    # to PyTorch (B, C_out, L_out) is done once here in the wrapper.
    return jnp.transpose(out.reshape(B, l_out, c_out), (0, 2, 1))


def init_params(key, in_channels, out_channels, conv_kernel_size, num_conv_blocks):
    """PyTorch Conv1d default init: U(-1/sqrt(fan_in), +), fan_in = C_in * K."""
    weights, biases = [], []
    c_in = in_channels
    keys = jax.random.split(key, 2 * num_conv_blocks)
    for i in range(num_conv_blocks):
        fan_in = c_in * conv_kernel_size
        bound = 1.0 / (fan_in ** 0.5)
        w = jax.random.uniform(keys[2 * i], (conv_kernel_size, c_in, out_channels),
                               jnp.float32, -bound, bound)
        b = jax.random.uniform(keys[2 * i + 1], (1, out_channels),
                               jnp.float32, -bound, bound)
        weights.append(w)
        biases.append(b)
        c_in = out_channels
    return weights, biases


def reference_forward(x, weights, biases, max_pool_kernel_size):
    """Pure-JAX/XLA reference with identical semantics (for correctness check)."""
    h = x.astype(jnp.float32)
    for w, b in zip(weights, biases):
        w_oik = jnp.transpose(w, (2, 1, 0))          # (C_out, C_in, K)
        h = jax.lax.conv_general_dilated(
            h, w_oik, window_strides=(1,), padding='SAME',
            dimension_numbers=('NCH', 'OIH', 'NCH'),
            precision=jax.lax.Precision.HIGHEST)
        h = jnp.maximum(h + b.reshape(1, -1, 1), 0.0)
    B, C, L = h.shape
    lo = L // max_pool_kernel_size
    h = h[:, :, :lo * max_pool_kernel_size]
    return h.reshape(B, C, lo, max_pool_kernel_size).max(axis=-1)


if __name__ == "__main__":
    root = jax.random.PRNGKey(0)

    configs = [
        # module defaults, f32 MXU
        dict(B=2, c_in=4, c_out=8,  L=16, K=3, mp=2, n_blocks=1,
             dtype=jnp.float32, atol=1e-4),
        # stacked convs, f32 MXU
        dict(B=2, c_in=4, c_out=16, L=32, K=3, mp=4, n_blocks=2,
             dtype=jnp.float32, atol=1e-4),
        # b_tile=2 path: two batch elements folded into one grid step
        dict(B=4, c_in=4, c_out=8,  L=16, K=3, mp=2, n_blocks=2,
             dtype=jnp.float32, atol=1e-4),
        # bf16 MXU operands (v6e/v7x fast path), looser tolerance vs f32 reference
        dict(B=2, c_in=4, c_out=16, L=32, K=3, mp=4, n_blocks=2,
             dtype=jnp.bfloat16, atol=3e-2),
    ]
    for cfg in configs:
        root, k_param, k_x = jax.random.split(root, 3)
        x = jax.random.normal(k_x, (cfg["B"], cfg["c_in"], cfg["L"]), jnp.float32)
        weights, biases = init_params(k_param, cfg["c_in"], cfg["c_out"],
                                      cfg["K"], cfg["n_blocks"])

        out = conv_block_forward(x, weights, biases,
                                 conv_kernel_size=cfg["K"],
                                 max_pool_kernel_size=cfg["mp"],
                                 compute_dtype=cfg["dtype"])
        out = jax.block_until_ready(out)

        ref = reference_forward(x, weights, biases, cfg["mp"])
        assert out.shape == (cfg["B"], cfg["c_out"], cfg["L"] // cfg["mp"]), out.shape
        max_err = float(jnp.max(jnp.abs(out - ref)))
        assert jnp.allclose(out, ref, atol=cfg["atol"], rtol=cfg["atol"]), max_err

    print("KERNEL_OK")
</pallas_src>

<mosaic_0001>
module attributes {stable_mosaic.version = 11 : i64} {
  func.func @conv_block_kernel(%arg0: i32, %arg1: memref<24x4xf32, #tpu.memory_space<vmem>>, %arg2: memref<12x8xf32, #tpu.memory_space<vmem>>, %arg3: memref<1x8xf32, #tpu.memory_space<vmem>>, %arg4: memref<8x8xf32, #tpu.memory_space<vmem>>, %arg5: memref<24x8xf32, #tpu.memory_space<vmem>>) attributes {dimension_semantics = [#tpu.dimension_semantics<parallel>], iteration_bounds = array<i64: 2>, scalar_prefetch = 0 : i64, scratch_operands = 1 : i64, tpu.core_type = #tpu.core_type<tc>, window_params = [{transform_indices = @transform_0, window_bounds = array<i64: 24, 4>}, {pipeline_mode = #tpu.pipeline_mode<synchronous>, transform_indices = @transform_1, window_bounds = array<i64: 12, 8>}, {pipeline_mode = #tpu.pipeline_mode<synchronous>, transform_indices = @transform_2, window_bounds = array<i64: 1, 8>}, {transform_indices = @transform_3, window_bounds = array<i64: 8, 8>}]} {
    %cst = arith.constant 0.000000e+00 : f32
    %0 = vector.broadcast %cst : f32 to vector<24x8xf32>
    %c0 = arith.constant 0 : index
    %c0_0 = arith.constant 0 : index
    %1 = vector.load %arg5[%c0, %c0_0] : memref<24x8xf32, #tpu.memory_space<vmem>>, vector<24x8xf32>
    tpu.vector_store %arg5[%c0, %c0_0], %0 {strides = array<i32>} : memref<24x8xf32, #tpu.memory_space<vmem>>, vector<24x8xf32>,
    %c0_1 = arith.constant 0 : index
    %c0_2 = arith.constant 0 : index
    %2 = vector.load %arg1[%c0_1, %c0_2] : memref<24x4xf32, #tpu.memory_space<vmem>>, vector<22x4xf32>
    %c1 = arith.constant 1 : index
    %c0_3 = arith.constant 0 : index
    %3 = vector.load %arg1[%c1, %c0_3] : memref<24x4xf32, #tpu.memory_space<vmem>>, vector<22x4xf32>
    %c2 = arith.constant 2 : index
    %c0_4 = arith.constant 0 : index
    %4 = vector.load %arg1[%c2, %c0_4] : memref<24x4xf32, #tpu.memory_space<vmem>>, vector<22x4xf32>
    %5 = tpu.concatenate %2, %3, %4 in 1 : vector<22x4xf32>, vector<22x4xf32>, vector<22x4xf32> -> vector<22x12xf32>
    %c0_5 = arith.constant 0 : index
    %c0_6 = arith.constant 0 : index
    %6 = vector.load %arg2[%c0_5, %c0_6] : memref<12x8xf32, #tpu.memory_space<vmem>>, vector<12x8xf32>
    %cst_7 = arith.constant dense<0.000000e+00> : vector<22x8xf32>
    %7 = tpu.matmul %5, %6, %cst_7 {dimension_numbers = #tpu.dot_dimension_numbers<[1], [0], [0], [1], [0, 0, 1, 1], [], []>} : vector<22x12xf32>, vector<12x8xf32>, vector<22x8xf32> -> vector<22x8xf32>
    %c0_8 = arith.constant 0 : index
    %c0_9 = arith.constant 0 : index
    %8 = vector.load %arg3[%c0_8, %c0_9] : memref<1x8xf32, #tpu.memory_space<vmem>>, vector<1x8xf32>
    %9 = vector.broadcast %8 : vector<1x8xf32> to vector<22x8xf32>
    %10 = arith.addf %7, %9 : vector<22x8xf32>
    %cst_10 = arith.constant 0.000000e+00 : f32
    %11 = vector.broadcast %cst_10 : f32 to vector<22x8xf32>
    %12 = arith.maximumf %10, %11 : vector<22x8xf32>
    %c1_11 = arith.constant 1 : index
    %c0_12 = arith.constant 0 : index
    %13 = vector.load %arg5[%c1_11, %c0_12] : memref<24x8xf32, #tpu.memory_space<vmem>>, vector<22x8xf32>
    tpu.vector_store %arg5[%c1_11, %c0_12], %12 {strides = array<i32>} : memref<24x8xf32, #tpu.memory_space<vmem>>, vector<22x8xf32>,
    %c1_13 = arith.constant 1 : index
    %c0_14 = arith.constant 0 : index
    %14 = tpu.strided_load %arg5[%c1_13, %c0_14] {strides = array<i32: 2, 1>} : memref<24x8xf32, #tpu.memory_space<vmem>>, vector<8x8xf32>
    %c2_15 = arith.constant 2 : index
    %c0_16 = arith.constant 0 : index
    %15 = tpu.strided_load %arg5[%c2_15, %c0_16] {strides = array<i32: 2, 1>} : memref<24x8xf32, #tpu.memory_space<vmem>>, vector<8x8xf32>
    %16 = arith.maximumf %14, %15 : vector<8x8xf32>
    %c0_17 = arith.constant 0 : index
    %c0_18 = arith.constant 0 : index
    %17 = vector.load %arg4[%c0_17, %c0_18] : memref<8x8xf32, #tpu.memory_space<vmem>>, vector<8x8xf32>
    tpu.vector_store %arg4[%c0_17, %c0_18], %16 {strides = array<i32>} : memref<8x8xf32, #tpu.memory_space<vmem>>, vector<8x8xf32>,
    return
  }
  func.func @transform_0(%arg0: i32) -> (i32, i32) {
    %c0_i32 = arith.constant 0 : i32
    %c0_i32_0 = arith.constant 0 : i32
    return %arg0, %c0_i32 : i32, i32
  }
  func.func @transform_1(%arg0: i32) -> (i32, i32) {
    %c0_i32 = arith.constant 0 : i32
    %c0_i32_0 = arith.constant 0 : i32
    %c0_i32_1 = arith.constant 0 : i32
    return %c0_i32, %c0_i32_0 : i32, i32
  }
  func.func @transform_2(%arg0: i32) -> (i32, i32) {
    %c0_i32 = arith.constant 0 : i32
    %c0_i32_0 = arith.constant 0 : i32
    %c0_i32_1 = arith.constant 0 : i32
    return %c0_i32, %c0_i32_0 : i32, i32
  }
  func.func @transform_3(%arg0: i32) -> (i32, i32) {
    %c0_i32 = arith.constant 0 : i32
    %c0_i32_0 = arith.constant 0 : i32
    return %arg0, %c0_i32 : i32, i32
  }
}

</mosaic_0001>

<bundles_post_ra>
// kernel: tpu_custom_call.1
= control target key start
LH: loop header
LB: loop body
LE: loop exit
PB: predicated region body
PF: predicated region fallthrough
CT: control target
= control target key end

     0   :  { %s387_s12 = smov 0   ;;  %s441_s0 = inlined_call_operand.vmem [shape: f32[48,4], index: 0, kind: input, shape index: {}]   ;;  %s442_s1 = inlined_call_operand.vmem [shape: f32[12,8], index: 1, kind: input, shape index: {}]   ;;  %s443_s2 = inlined_call_operand.vmem [shape: f32[1,8], index: 2, kind: input, shape index: {}]   ;;  %s444_s3 = inlined_call_operand.vmem [shape: f32[16,8], index: 3, kind: output, shape index: {}]  }
   0x1 LB: > { %s393_s13 = sadd.s32 4294967295, %s362_s12   ;;  %p331_p0 = scmp.ge.s32.totalorder %s362_s12, 1  ;;  %s362_s12 = sphi %s387_s12, %s13_s12  }
   0x2   : > { %p138_p1 = scmp.lt.s32.totalorder %s362_s12, 3 }
   0x4   : > { %p139_p2 = pnand %p331_p0, %p138_p1 }
   0x5   : > { %s161_s14 = smul.u32 (!%p139_p2), 3, %s393_s13  ;;  %s364_s19 = smov (!%p139_p2), 4  }
   0x6   : > { %142 = sbr.rel (%p139_p2) target bundleno = 281 (0x119), region = 32  ;;  %s365_s20 = smov (!%p139_p2), 8  }
   0x7   : > { %p162_p3 = scmp.lt.s32.totalorder (!%p139_p2), %s161_s14, 5  ;;  %p167_p4 = scmp.lt.s32.totalorder (!%p139_p2), %s393_s13, 1 }
   0xb   : > { %s446_s14 = smov (!%p162_p3, %s161_s14), 5  ;;  %v216_v6 = vld [vmem:[%s442_s1 + $0x8] sm:$0xf]  ;;  %vm231_vm0 = vcmask 1043456   ;;  %v215_v7 = vld [vmem:[%s442_s1] sm:$0xff]  ;;  %vm171_vm1 = vcmask 64512  }
   0xc   : > { %s332_s15 = sshll.u32 %s446_s14, 3  ;;  %334 = vmatpush.msk.msra.mxu0 %vm231_vm0, %v216_v6  ;;  %341 = vmatpush.msk.msra.mxu2 %vm231_vm0, %v216_v6  ;;  %v366_v10 = vmov 0.0   ;;  %vm208_vm2 = vcmask 31744   ;;  %vm221_vm3 = vcmask 97280   ;;  %v355_v24 = vld [vmem:[%s443_s2] ss:$0 sm:$0xff] }
   0xd   : > { %s401_s18 = scalar_lea.vmem %s441_s0, %s332_s15  ;;  %340 = vmatpush.msk.msra.mxu1 %vm231_vm0, %v216_v6  ;;  %172 = vst.msk [vmem:[#allocation2] sm:$0xff] %vm171_vm1, %v366_v10  ;;  %s448_s13 = smov (!%p167_p4, %s393_s13), 1 }
   0xe   : > { %v178_v0 = vld [vmem:[%s401_s18 + $0x1] sm:$0xff]  ;;  %v180_v2 = vld [vmem:[%s401_s18 + $0x11] sm:$0x3f]  ;;  %v179_v3 = vld [vmem:[%s401_s18 + $0x9] sm:$0xff]  ;;  %250 = vmatpush.msra.mxu0 %v215_v7  ;;  %343 = vmatpush.msra.mxu2 %v215_v7  ;;  %173 = vst.msk [vmem:[#allocation2 + $0x8] sm:$0xff] %vm171_vm1, %v366_v10  ;;  %s333_s27 = sshll.u32 %s448_s13, 3 }
   0xf   : > { %v181_v1 = vld [vmem:[%s401_s18 + $0x2] sm:$0xff]  ;;  %187 = vrot.lane.b32.xlu0 %v178_v0, %s364_s19  ;;  %191 = vrot.lane.b32.xlu2 %v180_v2, %s364_s19  ;;  %v182_v4 = vld [vmem:[%s401_s18 + $0xa] sm:$0xff]  ;;  %174 = vst.msk [vmem:[#allocation2 + $0x10] sm:$0xff] %vm171_vm1, %v366_v10  ;;  %s170_s30 = scalar_lea.vmem %s444_s3, %s333_s27 }
  0x10   : > { %199 = vrot.lane.b32.xlu1 %v181_v1, %s365_s20  ;;  %v183_v5 = vld [vmem:[%s401_s18 + $0x12] sm:$0x3f]  ;;  %342 = vmatpush.msra.mxu1 %v215_v7  ;;  %v175_v14 = vld [vmem:[%s401_s18] sm:$0xff]  ;;  %v176_v19 = vld [vmem:[%s401_s18 + $0x8] sm:$0xff] }
  0x11   : > { %v177_v9 = vld [vmem:[%s401_s18 + $0x10] sm:$0x3f] }
  0x17   : > { %189 = vrot.lane.b32.xlu0 %v179_v3, %s364_s19  ;;  %203 = vrot.lane.b32.xlu2 %v183_v5, %s365_s20 }
  0x18   : > { %201 = vrot.lane.b32.xlu1 %v182_v4, %s365_s20 }
  0x69   : > { %v192_v8 = vpop.permute.xlu2 %191 }
  0x6a   : > { %v211_v11 = vsel %vm208_vm2, %v177_v9, %v192_v8 }
  0x71   : > { %v204_v12 = vpop.permute.xlu2 %203 }
  0x72   : > { %v214_v13 = vsel %vm171_vm1, %v211_v11, %v204_v12 }
  0x73   : > { %337 = vmatmul.msk.f32.vlgmr.msra.gmra.mxu2 %vm221_vm3, %v214_v13 }
  0x81   : > { %v188_v15 = vpop.permute.xlu0 %187 }
  0x82   : > { %v200_v16 = vpop.permute.xlu1 %199  ;;  %v209_v17 = vsel %vm208_vm2, %v175_v14, %v188_v15 }
  0x83   : > { %v212_v18 = vsel %vm171_vm1, %v209_v17, %v200_v16 }
  0x84   : > { %335 = vmatmul.msk.f32.vlgmr.msra.gmra.mxu0 %vm221_vm3, %v212_v18 }
  0x89   : > { %v190_v20 = vpop.permute.xlu0 %189 }
  0x8a   : > { %v202_v21 = vpop.permute.xlu1 %201  ;;  %v210_v22 = vsel %vm208_vm2, %v176_v19, %v190_v20 }
  0x8b   : > { %v213_v23 = vsel %vm171_vm1, %v210_v22, %v202_v21 }
  0x8c   : > { %336 = vmatmul.msk.f32.vlgmr.msra.gmra.mxu1 %vm221_vm3, %v213_v23 }
  0xf6   : > { %v258_v25 = vpop.f32.mrf.mxu2 }
 0x101   : > { %v252_v26 = vpop.f32.mrf.mxu0 }
 0x102   : > { %v253_v27 = vadd.f32 %v355_v24, %v252_v26 }
 0x104   : > { %v261_v28 = vmax.f32 %v253_v27, 0.0 }
 0x106   : > { %264 = vst.msk [vmem:[#allocation2 + $0x1] sm:$0xff] %vm171_vm1, %v261_v28 }
 0x109   : > { %v255_v29 = vpop.f32.mrf.mxu1 }
 0x10a   : > { %v256_v30 = vadd.f32 %v355_v24, %v255_v29 }
 0x10c   : > { %v262_v31 = vmax.f32 %v256_v30, 0.0 }
 0x10e   : > { %265 = vst.msk [vmem:[#allocation2 + $0x9] sm:$0xff] %vm171_vm1, %v262_v31 }
 0x115   : > { %v269_v32 = vld [vmem:[#allocation2 + $0x1] ss:$2 sm:$0xff]  ;;  %v271_v33 = vld [vmem:[#allocation2 + $0x2] ss:$2 sm:$0xff] }
 0x116   : > { %v272_v34 = vmax.f32 %v269_v32, %v271_v33 }
 0x118   : > { %273 = vst.msk [vmem:[%s170_s30] sm:$0xff] %vm171_vm1, %v272_v34 }
 0x119 PF: > { %s13_s12 = sadd.s32 1, %s362_s12  }
 0x11a   : > { %p10_p5 = scmp.ge.s32.totalorder %s13_s12, 4  }
 0x11c   :  { %12 = sbr.rel (!%p10_p5) target bundleno = 1 (0x1), region = 64 }

</bundles_post_ra>
